<compile_context>
chip_gen: v6e
topology: v6e:2x2x1
jax: 0.10.0
libtpu: 0.0.40
codegen_flags: <defaults>
</compile_context>

<pallas_src>
from functools import partial
from math import prod, sqrt

import jax
import jax.numpy as jnp
from jax.experimental import pallas as pl
from jax.experimental.pallas import tpu as pltpu


def _round_up(x: int, m: int) -> int:
    return (x + m - 1) // m * m


# ---------------------------------------------------------------------------
# In-kernel stateless PRNG for dropout (murmur3-style fmix32 over indices).
# ---------------------------------------------------------------------------
def _keep_mask(shape, seed_u32, salt, row_off_u32, thresh23):
    """Boolean keep-mask: hash(seed, global_row, col) compared to a threshold."""
    r = jax.lax.broadcasted_iota(jnp.int32, shape, 0).astype(jnp.uint32) + row_off_u32
    c = jax.lax.broadcasted_iota(jnp.int32, shape, 1).astype(jnp.uint32)
    h = (r * jnp.uint32(0x9E3779B1)) ^ (c * jnp.uint32(0x85EBCA77))
    h = h ^ (seed_u32 * jnp.uint32(0xC2B2AE3D)) ^ jnp.uint32(salt)
    h = h ^ (h >> 16)
    h = h * jnp.uint32(0x85EBCA6B)
    h = h ^ (h >> 13)
    h = h * jnp.uint32(0xC2B2AE35)
    h = h ^ (h >> 16)
    # Compare the top 23 bits as int32 (avoids relying on unsigned compare).
    return (h >> 9).astype(jnp.int32) >= jnp.int32(thresh23)


# ---------------------------------------------------------------------------
# Fused Prenet kernel: relu(drop(relu(x @ W1)) @ W2') -> drop -> store.
# ---------------------------------------------------------------------------
def _prenet_kernel(seed_ref, x_ref, w1_ref, w2_ref, o_ref, *,
                   dropout_p: float, train: bool, tile_rows: int):
    """seed_ref: (1,) int32 scalar-prefetch seed (SMEM)
    x_ref   : (TM, mel)      row tile of flattened input
    w1_ref  : (mel, d1_pad)  resident weight, (in, out) layout, lane-dense
    w2_ref  : (d1_pad, d2_pad) resident weight (keep-scale of drop1 pre-folded)
    o_ref   : (TM, d2_pad)   lane-dense output tile
    """
    do_dropout = bool(train) and dropout_p > 0.0
    cdt = w1_ref.dtype  # compute dtype (weights cast once in the wrapper)

    # Layer 1: all leading dims folded into M -> one 2-D MXU matmul, f32 acc.
    h = jnp.dot(x_ref[...].astype(cdt), w1_ref[...],
                preferred_element_type=jnp.float32)
    h = jnp.maximum(h, 0.0)

    if do_dropout:
        thresh = min(int(round(dropout_p * (1 << 23))), (1 << 23) - 1)
        seed_u = seed_ref[0].astype(jnp.uint32)
        row_off = (pl.program_id(0) * tile_rows).astype(jnp.uint32)
        # keep-scale of this dropout is folded into w2 by the wrapper.
        h = jnp.where(_keep_mask(h.shape, seed_u, 0x3C6EF372, row_off, thresh),
                      h, 0.0)

    # Layer 2.
    y = jnp.dot(h.astype(cdt), w2_ref[...], preferred_element_type=jnp.float32)
    y = jnp.maximum(y, 0.0)

    if do_dropout:
        y = jnp.where(_keep_mask(y.shape, seed_u, 0x7F4A7C15, row_off, thresh),
                      y * (1.0 / (1.0 - dropout_p)), 0.0)

    o_ref[...] = y.astype(o_ref.dtype)


# ---------------------------------------------------------------------------
# One-time weight preparation (cache the result; not in the per-call path).
# ---------------------------------------------------------------------------
def prepare_prenet_params(w1_oi, w2_oi, *, dropout_p, train,
                          compute_dtype=jnp.bfloat16):
    """w1_oi: (d1, mel), w2_oi: (d2, d1)  -- PyTorch nn.Linear (out, in), bias=False.

    Returns (w1p, w2p, out_features): (in, out)-layout weights with out-feature
    axes zero-padded to multiples of 128 and cast to compute_dtype; in train
    mode the layer-1 dropout keep-scale is folded into w2.
    """
    d1, mel = w1_oi.shape
    d2, d1b = w2_oi.shape
    assert d1b == d1
    d1p = _round_up(d1, 128)
    d2p = _round_up(d2, 128)

    w1 = jnp.transpose(w1_oi)                        # (mel, d1)
    w2 = jnp.transpose(w2_oi)                        # (d1, d2)
    if train and dropout_p > 0.0:
        w2 = w2 * (1.0 / (1.0 - float(dropout_p)))   # fold drop1 keep-scale
    w1 = jnp.pad(w1, ((0, 0), (0, d1p - d1)))
    w2 = jnp.pad(w2, ((0, d1p - d1), (0, d2p - d2)))
    return w1.astype(compute_dtype), w2.astype(compute_dtype), int(d2)


def _pick_tm(n, mel, d1p, d2p, x_itemsize, out_itemsize, block_rows):
    # Per-row VMEM bytes: double-buffered x/out tiles + f32 intermediates.
    per_row = 2 * (mel * x_itemsize + d2p * out_itemsize) + 4 * (d1p + d2p)
    budget = 20 * 1024 * 1024            # portable down to v7x's smaller VMEM
    cap = max(8, (budget // per_row) // 8 * 8)
    tm = min(int(block_rows), cap)
    if n > 8:
        # >= 2 grid steps so the "parallel" axis can shard across v7x's 2 TCs.
        tm = min(tm, _round_up((n + 1) // 2, 8))
    return max(8, min(tm, _round_up(n, 8)))


# ---------------------------------------------------------------------------
# Forward pass.
# ---------------------------------------------------------------------------
def prenet_forward(x, w1_io, w2_io, out_features, *, dropout_p=0.5, train=False,
                   seed=0, out_dtype=jnp.float32, block_rows=1024):
    """x: (..., mel) -> (..., out_features).  w1_io/w2_io from prepare_prenet_params."""
    if not (0.0 <= float(dropout_p) < 1.0):
        raise ValueError("dropout_p must be in [0, 1)")

    lead = x.shape[:-1]
    mel = x.shape[-1]
    melb, d1p = w1_io.shape
    d1pb, d2p = w2_io.shape
    assert melb == mel and d1pb == d1p

    n = prod(lead) if lead else 1
    x2 = x.reshape(n, mel)                 # fold batch/time into matmul M

    tm = _pick_tm(n, mel, d1p, d2p, x2.dtype.itemsize,
                  jnp.dtype(out_dtype).itemsize, block_rows)
    num_tiles = pl.cdiv(n, tm)             # ragged last block: stores are masked

    seed_arr = jnp.asarray([seed], dtype=jnp.int32)

    out2 = pl.pallas_call(
        partial(_prenet_kernel, dropout_p=float(dropout_p), train=bool(train),
                tile_rows=tm),
        out_shape=jax.ShapeDtypeStruct((n, d2p), out_dtype),
        grid_spec=pltpu.PrefetchScalarGridSpec(
            num_scalar_prefetch=1,
            grid=(num_tiles,),
            in_specs=[
                pl.BlockSpec((tm, mel), lambda i, s: (i, 0)),
                # Constant index_map -> weights stay VMEM-resident across the grid.
                # TODO(synk): pipeline_mode=pl.Buffered(1) would halve their
                # residency on v7x; omitted for broad jax-version compatibility.
                pl.BlockSpec((mel, d1p), lambda i, s: (0, 0)),
                pl.BlockSpec((d1p, d2p), lambda i, s: (0, 0)),
            ],
            out_specs=pl.BlockSpec((tm, d2p), lambda i, s: (i, 0)),
        ),
        compiler_params=pltpu.CompilerParams(
            dimension_semantics=("parallel",),
            vmem_limit_bytes=32 * 1024 * 1024,
        ),
    )(seed_arr, x2, w1_io, w2_io)

    if out_features != d2p:
        out2 = out2[:, :out_features]      # drop lane-padding columns
    return out2.reshape(*lead, out_features)


def make_params(key, mel_dim, prenet_dim):
    """Replicates Linear_init.__init__: xavier_uniform_, gain('linear')=1, no bias."""
    d1, d2 = prenet_dim
    k1, k2 = jax.random.split(key)

    def xavier_uniform(k, out_dim, in_dim, gain=1.0):
        bound = gain * sqrt(6.0 / (in_dim + out_dim))
        return jax.random.uniform(k, (out_dim, in_dim), minval=-bound,
                                  maxval=bound, dtype=jnp.float32)

    w1 = xavier_uniform(k1, d1, mel_dim)   # (d1, mel_dim)
    w2 = xavier_uniform(k2, d2, d1)        # (d2, d1)
    return w1, w2


if __name__ == "__main__":
    # Prenet(mel_dim=32, prenet_dim=[64, 32], dropout_p=0.5), input (B, T, mel).
    B, T, MEL = 2, 16, 32
    D1, D2 = 64, 32
    DROPOUT_P = 0.5

    key = jax.random.PRNGKey(0)
    kx, kp = jax.random.split(key)
    x = jax.random.normal(kx, (B, T, MEL), dtype=jnp.float32)
    w1, w2 = make_params(kp, MEL, (D1, D2))         # PyTorch (out, in) layouts

    # Pure-JAX reference (eval mode: dropout is identity).
    hp = jax.lax.Precision.HIGHEST
    ref = jnp.maximum(
        jnp.dot(jnp.maximum(jnp.dot(x, w1.T, precision=hp), 0.0), w2.T,
                precision=hp), 0.0)

    # 1) Eval mode, f32 compute: near-exact check.
    w1f, w2f, dout = prepare_prenet_params(
        w1, w2, dropout_p=DROPOUT_P, train=False, compute_dtype=jnp.float32)
    out_f32 = jax.block_until_ready(
        prenet_forward(x, w1f, w2f, dout, dropout_p=DROPOUT_P, train=False))
    assert out_f32.shape == (B, T, D2)
    assert jnp.allclose(out_f32, ref, atol=5e-3, rtol=5e-3)

    # 2) Eval mode, default bf16 compute (full-rate MXU path), loose tolerance.
    w1b, w2b, _ = prepare_prenet_params(w1, w2, dropout_p=DROPOUT_P, train=False)
    out_bf16 = jax.block_until_ready(
        prenet_forward(x, w1b, w2b, dout, dropout_p=DROPOUT_P, train=False))
    assert out_bf16.shape == (B, T, D2)
    assert float(jnp.max(jnp.abs(out_bf16 - ref))) < 0.25

    # 3) Train mode: in-kernel hash-based dropout (same keep-prob/scale
    #    semantics as nn.Dropout).
    # TODO(synk): torch's RNG stream is not reproduced bit-for-bit.
    w1t, w2t, _ = prepare_prenet_params(w1, w2, dropout_p=DROPOUT_P, train=True)
    out_tr = jax.block_until_ready(
        prenet_forward(x, w1t, w2t, dout, dropout_p=DROPOUT_P, train=True,
                       seed=123))
    assert out_tr.shape == (B, T, D2)
    assert bool(jnp.all(jnp.isfinite(out_tr)))
    pos = ref > 0.0
    dropped = float(jnp.sum(pos & (out_tr == 0.0))) / max(float(jnp.sum(pos)), 1.0)
    assert 0.3 < dropped < 0.95, dropped

    print("KERNEL_OK")
</pallas_src>

<mosaic_0001>
module attributes {stable_mosaic.version = 11 : i64} {
  func.func @_prenet_kernel(%arg0: i32, %arg1: memref<1xi32, #tpu.memory_space<smem>>, %arg2: memref<16x32xf32, #tpu.memory_space<vmem>>, %arg3: memref<32x128xf32, #tpu.memory_space<vmem>>, %arg4: memref<128x128xf32, #tpu.memory_space<vmem>>, %arg5: memref<16x128xf32, #tpu.memory_space<vmem>>) attributes {dimension_semantics = [#tpu.dimension_semantics<parallel>], iteration_bounds = array<i64: 2>, scalar_prefetch = 1 : i64, scratch_operands = 0 : i64, tpu.core_type = #tpu.core_type<tc>, window_params = [{transform_indices = @transform_0, window_bounds = array<i64: 16, 32>}, {pipeline_mode = #tpu.pipeline_mode<synchronous>, transform_indices = @transform_1, window_bounds = array<i64: 32, 128>}, {pipeline_mode = #tpu.pipeline_mode<synchronous>, transform_indices = @transform_2, window_bounds = array<i64: 128, 128>}, {transform_indices = @transform_3, window_bounds = array<i64: 16, 128>}]} {
    %c0 = arith.constant 0 : index
    %c0_0 = arith.constant 0 : index
    %0 = vector.load %arg2[%c0, %c0_0] : memref<16x32xf32, #tpu.memory_space<vmem>>, vector<16x32xf32>
    %c0_1 = arith.constant 0 : index
    %c0_2 = arith.constant 0 : index
    %1 = vector.load %arg3[%c0_1, %c0_2] : memref<32x128xf32, #tpu.memory_space<vmem>>, vector<32x128xf32>
    %cst = arith.constant dense<0.000000e+00> : vector<16x128xf32>
    %2 = tpu.matmul %0, %1, %cst {dimension_numbers = #tpu.dot_dimension_numbers<[1], [0], [0], [1], [0, 0, 1, 1], [], []>} : vector<16x32xf32>, vector<32x128xf32>, vector<16x128xf32> -> vector<16x128xf32>
    %cst_3 = arith.constant 0.000000e+00 : f32
    %3 = vector.broadcast %cst_3 : f32 to vector<16x128xf32>
    %4 = arith.maximumf %2, %3 : vector<16x128xf32>
    %c0_4 = arith.constant 0 : index
    %c0_5 = arith.constant 0 : index
    %5 = vector.load %arg4[%c0_4, %c0_5] : memref<128x128xf32, #tpu.memory_space<vmem>>, vector<128x128xf32>
    %cst_6 = arith.constant dense<0.000000e+00> : vector<16x128xf32>
    %6 = tpu.matmul %4, %5, %cst_6 {dimension_numbers = #tpu.dot_dimension_numbers<[1], [0], [0], [1], [0, 0, 1, 1], [], []>} : vector<16x128xf32>, vector<128x128xf32>, vector<16x128xf32> -> vector<16x128xf32>
    %cst_7 = arith.constant 0.000000e+00 : f32
    %7 = vector.broadcast %cst_7 : f32 to vector<16x128xf32>
    %8 = arith.maximumf %6, %7 : vector<16x128xf32>
    %c0_8 = arith.constant 0 : index
    %c0_9 = arith.constant 0 : index
    %9 = vector.load %arg5[%c0_8, %c0_9] : memref<16x128xf32, #tpu.memory_space<vmem>>, vector<16x128xf32>
    tpu.vector_store %arg5[%c0_8, %c0_9], %8 {strides = array<i32>} : memref<16x128xf32, #tpu.memory_space<vmem>>, vector<16x128xf32>,
    return
  }
  func.func @transform_0(%arg0: i32, %arg1: memref<1xi32, #tpu.memory_space<smem>>) -> (i32, i32) {
    %c0_i32 = arith.constant 0 : i32
    %c0_i32_0 = arith.constant 0 : i32
    return %arg0, %c0_i32 : i32, i32
  }
  func.func @transform_1(%arg0: i32, %arg1: memref<1xi32, #tpu.memory_space<smem>>) -> (i32, i32) {
    %c0_i32 = arith.constant 0 : i32
    %c0_i32_0 = arith.constant 0 : i32
    %c0_i32_1 = arith.constant 0 : i32
    return %c0_i32, %c0_i32_0 : i32, i32
  }
  func.func @transform_2(%arg0: i32, %arg1: memref<1xi32, #tpu.memory_space<smem>>) -> (i32, i32) {
    %c0_i32 = arith.constant 0 : i32
    %c0_i32_0 = arith.constant 0 : i32
    %c0_i32_1 = arith.constant 0 : i32
    return %c0_i32, %c0_i32_0 : i32, i32
  }
  func.func @transform_3(%arg0: i32, %arg1: memref<1xi32, #tpu.memory_space<smem>>) -> (i32, i32) {
    %c0_i32 = arith.constant 0 : i32
    %c0_i32_0 = arith.constant 0 : i32
    return %arg0, %c0_i32 : i32, i32
  }
}

</mosaic_0001>

<bundles_post_ra>
// kernel: tpu_custom_call.1
= control target key start
LH: loop header
LB: loop body
LE: loop exit
PB: predicated region body
PF: predicated region fallthrough
CT: control target
= control target key end

     0   :  { %10 = vsyncpa [#allocation5], 0  ;;  %s1062_s0 = inlined_call_operand.<no memory space> [shape: s32[1], index: 0, kind: input, shape index: {}]   ;;  %s1063_s1 = inlined_call_operand.hbm [shape: f32[32,32], index: 1, kind: input, shape index: {}]   ;;  %s1064_s2 = inlined_call_operand.hbm [shape: f32[32,128], index: 2, kind: input, shape index: {}]   ;;  %s1065_s3 = inlined_call_operand.hbm [shape: f32[128,128], index: 3, kind: input, shape index: {}]   ;;  %s1066_s4 = inlined_call_operand.hbm [shape: f32[32,128], index: 4, kind: output, shape index: {}]  }
   0x1   :  { %12 = vsyncpa [#allocation5 + $0x1], 0 }
   0x2   :  { %13 = vsyncpa [#allocation8], 0 }
   0x3   :  { %14 = vsyncpa [#allocation6], 0 }
   0x4   :  { %16 = vsyncpa [#allocation6 + $0x1], 0  ;;  %s859_s15 = smov 0   ;;  %s861_s0 = smov 0  }
   0x5   :  { %s863_s16 = smov 0   ;;  %s865_s17 = smov 0  }
   0x6 LB: > { %s880_s18 = sadd.s32 4294967295, %s824_s17   ;;  %s513_s19 = sadd.s32 4294967294, %s824_s17   ;;  %s824_s17 = sphi %s865_s17, %s1087_s17   ;;  %s820_s16 = sphi %s863_s16, %s1086_s16   ;;  %s816_s0 = sphi %s861_s0, %s1085_s0   ;;  %s812_s15 = sphi %s859_s15, %s1084_s15  }
   0x7   : > { %p42_p0 = scmp.ne.s32.totalorder %s816_s0, %s812_s15  ;;  %p1067_p1 = scmp.eq.s32.totalorder %s880_s18, 0 }
   0x8   : > { %p108_p2 = scmp.eq.s32.totalorder %s880_s18, 1  ;;  %p114_p3 = scmp.eq.s32.totalorder %s513_s19, 1 }
   0x9   : > { %p889_p4 = por %p1067_p1, %p42_p0  ;;  %p514_p5 = scmp.ge.s32.totalorder %s824_s17, 1 }
   0xa   : > { %p894_p6 = por %p114_p3, %p42_p0  ;;  %p121_p7 = scmp.lt.s32.totalorder %s824_s17, 3 }
   0xb   : > { %s1071_s20 = scalar_select %p889_p4, 1, 0 }
   0xc   : > { %s1072_s21 = scalar_select %p894_p6, 1, 0 }
   0xd   : > { %p899_p8 = pnand %p514_p5, %p121_p7  ;;  %s826_s23 = smov [#allocation7]  }
   0xe   : > { %s133_s24 = sshll.u32 %s826_s23, 4  ;;  %s827_s26 = smov [#allocation9]   ;;  %s134_s24 = int_to_ptr.vmem [resolvable:$true] %s133_s24 }
   0xf   : > { %s1073_s22 = scalar_select %p899_p8, 1, 0 }
  0x10   : > { %p617_p9 = pneg %p899_p8  ;;  %s146_s27 = sshll.u32 %s827_s26, 4  ;;  %s147_s27 = int_to_ptr.vmem [resolvable:$true] %s146_s27 }
  0x11   : > { %s687_s28 = scalar_lea.vmem %s134_s24, 512  ;;  %p695_p5 = scmp.lt.s32.totalorder %s134_s24, %s134_s24 }
  0x12   : > { %p908_p11 = pnand %p617_p9, %p1067_p1  ;;  %p688_p13 = scmp.ne.s32.totalorder %s134_s24, %s687_s28 }
  0x13   : > { %p696_p7 = scmp.lt.s32.totalorder %s687_s28, %s687_s28 }
  0x14   : > { %p678_p12 = pneg %p908_p11 }
  0x15   : > { %p697_p10 = por %p696_p7, %p695_p5 }
  0x16   : > { %p690_p0 = pnand %p688_p13, %p678_p12 }
  0x18   : > { %p691_p3 = pneg %p690_p0 }
  0x1a   : > { %p698_p9 = pnand %p697_p10, %p691_p3 }
  0x1c   : > { %701 = shalt.err (!%p698_p9)
}
  0x1d   : > { %s828_s29 = smov 128   ;;  %s829_s30 = smov 8  }
  0x1e   : > { %620 = dma.hbm_to_vmem [thread:$0]  (!%p908_p11), %s1064_s2, 512, %s134_s24, [#allocation8], %s828_s29, %s828_s29, %s829_s30  }
  0x1f   : > { %s713_s7 = scalar_lea.vmem %s147_s27, 2048  ;;  %p721_p10 = scmp.lt.s32.totalorder %s147_s27, %s147_s27 }
  0x20   : > { %p714_p13 = scmp.ne.s32.totalorder %s147_s27, %s713_s7  ;;  %p722_p3 = scmp.lt.s32.totalorder %s713_s7, %s713_s7 }
  0x22   : > { %p716_p0 = pnand %p714_p13, %p678_p12  ;;  %p723_p7 = por %p722_p3, %p721_p10 }
  0x24   : > { %p717_p5 = pneg %p716_p0 }
  0x26   : > { %p724_p9 = pnand %p723_p7, %p717_p5 }
  0x28   : > { %727 = shalt.err (!%p724_p9)
}
  0x29   : > { %623 = dma.hbm_to_vmem [thread:$0]  (!%p908_p11), %s1065_s3, 2048, %s147_s27, [#allocation8], %s828_s29, %s828_s29, %s829_s30  }
  0x2a   : > { %s937_s10 = sadd.s32 1, %s824_s17   ;;  %s29_s11 = sadd.s32 1, %s820_s16 }
  0x2b   : > { %s26_s12 = ssub.s32 %s824_s17, %s937_s10  ;;  %p36_p12 = scmp.ne.s32.totalorder %s820_s16, %s816_s0 }
  0x2c   : > { %p27_p13 = scmp.eq.s32.totalorder %s26_s12, 0  ;;  %p37_p0 = scmp.eq.s32.totalorder %s824_s17, 0 }
  0x2d   : > { %p947_p5 = por %p108_p2, %p36_p12  ;;  %p634_p10 = scmp.lt.s32.totalorder %s824_s17, 2 }
  0x2e   : > { %s953_s14 = scalar_select %p27_p13, %s820_s16, %s29_s11  }
  0x2f   : > { %s1075_s13 = scalar_select %p947_p5, 1, 0 }
  0x30   : > { %p38_p3 = por %p37_p0, %p36_p12  ;;  %s160_s19 = sand.u32 1, %s820_s16  }
  0x31   : > { %s518_s23 = sshll.u32 %s160_s19, 4  ;;  %s533_s24 = sshll.u32 %s824_s17, 8 }
  0x32   : > { %s960_s27 = scalar_lea.hbm %s1063_s1, %s533_s24  ;;  %s164_s28 = scalar_lea.vmem [#allocation4], %s518_s23 }
  0x33   : > { %s171_s5 = sshll.u32 %s164_s28, 4  ;;  %p964_p2 = pnand %p634_p10, %p38_p3  ;;  %s962_s5 = int_to_ptr.vmem [resolvable:$true] %s171_s5 }
  0x34   : > { %s968_s7 = scalar_lea.sflag [#allocation5], %s160_s19  ;;  %s728_s8 = scalar_lea.hbm %s960_s27, 256 }
  0x35   : > { %p729_p11 = scmp.ne.s32.totalorder %s960_s27, %s728_s8  ;;  %p730_p7 = pneg %p964_p2 }
  0x36   : > { %s733_s12 = scalar_lea.hbm %s1063_s1, 512  ;;  %p734_p13 = scmp.lt.s32.totalorder %s960_s27, %s1063_s1 }
  0x37   : > { %p731_p9 = pnand %p730_p7, %p729_p11  ;;  %p735_p0 = scmp.lt.s32.totalorder %s733_s12, %s728_s8 }
  0x39   : > { %p732_p12 = pneg %p731_p9  ;;  %p736_p10 = por %p735_p0, %p734_p13 }
  0x3b   : > { %p737_p3 = pnand %p736_p10, %p732_p12 }
  0x3d   : > { %740 = shalt.err (!%p737_p3)
}
  0x3e   : > { %s741_s19 = scalar_lea.vmem %s962_s5, 256  ;;  %s830_s25 = smov [#allocation4]  }
  0x3f   : > { %p742_p1 = scmp.ne.s32.totalorder %s962_s5, %s741_s19  ;;  %s746_s26 = sshll.u32 %s830_s25, 4  ;;  %s747_s26 = int_to_ptr.vmem [resolvable:$false] %s746_s26 }
  0x40   : > { %s748_s28 = scalar_lea.vmem %s747_s26, 512  ;;  %p749_p9 = scmp.lt.s32.totalorder %s962_s5, %s747_s26 }
  0x41   : > { %p744_p6 = pnand %p742_p1, %p730_p7  ;;  %p750_p5 = scmp.lt.s32.totalorder %s748_s28, %s741_s19 }
  0x43   : > { %p745_p11 = pneg %p744_p6  ;;  %p751_p4 = por %p750_p5, %p749_p9 }
  0x45   : > { %p752_p8 = pnand %p751_p4, %p745_p11 }
  0x47   : > { %755 = shalt.err (!%p752_p8)
}
  0x48   : > { %627 = dma.hbm_to_vmem [thread:$0]  (!%p964_p2), %s960_s27, 256, %s962_s5, %s968_s7, %s828_s29, %s828_s29, %s829_s30  }
  0x49   : > { %p1077_p1 = scmp.ne.s32.totalorder %s1073_s22, 0 }
  0x4a   : > { %s995_s8 = sand.u32 (!%p1077_p1), 1, %s816_s0   ;;  %p1078_p4 = scmp.ne.s32.totalorder (!%p1077_p1), %s1071_s20, 0 }
  0x4b   : > { %183 = sbr.rel (%p1077_p1) target bundleno = 502 (0x1f6), region = 32  ;;  %s522_s9 = sshll.u32 (!%p1077_p1), %s995_s8, 4 }
  0x4c   : > { %s186_s11 = scalar_lea.sflag (!%p1077_p1), [#allocation5], %s995_s8  ;;  %s189_s6 = scalar_lea.vmem (!%p1077_p1), [#allocation4], %s522_s9 }
  0x50   : > { %799 = dma.done.wait (%p1078_p4), %s186_s11, 256  }
  0x51   : > { %801 = vsyncadd (%p1078_p4), %s186_s11, 4294967040  ;;  %p1079_p6 = scmp.eq.s32.totalorder %s880_s18, 0 }
  0x53   : > { %803 = dma.done.wait (%p1079_p6), [#allocation8], 2560   ;;  %p1080_p8 = pmov %p1079_p6 }
  0x54   : > { %vm228_vm0 = vcmask 261120   ;;  %v227_v0 = vld [vmem:[#allocation7 + $0x18] sm:$0xff]  ;;  %v226_v1 = vld [vmem:[#allocation7 + $0x10] sm:$0xff]  ;;  %v225_v3 = vld [vmem:[#allocation7 + $0x8] sm:$0xff]  ;;  %s219_s20 = scalar_lea.vmem [#allocation10], %s522_s9  ;;  %s534_s29 = sshll.u32 %s880_s18, 8 }
  0x55   : > { %805 = vsyncadd (%p1080_p8), [#allocation8], 4294964736  ;;  %559 = vmatprep.subr.mxu0 %v227_v0  ;;  %v222_v2 = vld [vmem:[%s189_s6] sm:$0xff]  ;;  %v327_v4 = vld [vmem:[#allocation9 + $0x78] sm:$0xff]  ;;  %s421_s22 = sshll.u32 %s219_s20, 4  ;;  %s1019_s5 = scalar_lea.hbm %s1066_s4, %s534_s29  ;;  %s1014_s22 = int_to_ptr.vmem [resolvable:$true] %s421_s22 }
  0x56   : > { %560 = vmatpush3.msra.mxu0 %v227_v0  ;;  %567 = vmatprep.mubr.msk.f32.mxu0 %vm228_vm0, %v222_v2  ;;  %v326_v5 = vld [vmem:[#allocation9 + $0x70] sm:$0xff]  ;;  %v224_v6 = vld [vmem:[#allocation7] sm:$0xff]  ;;  %v325_v7 = vld [vmem:[#allocation9 + $0x68] sm:$0xff]  ;;  %s408_s7 = scalar_lea.sflag [#allocation6], %s995_s8  ;;  %s756_s12 = scalar_lea.vmem %s1014_s22, 256 }
  0x57   : > { %561 = vmatprep.subr.mxu0 %v226_v1  ;;  %570 = vmatprep.subr.mxu1 %v327_v4  ;;  %v223_v8 = vld [vmem:[%s189_s6 + $0x8] sm:$0xff]  ;;  %v324_v9 = vld [vmem:[#allocation9 + $0x60] sm:$0xff]  ;;  %v322_v11 = vld [vmem:[#allocation9 + $0x50] sm:$0xff]  ;;  %p757_p5 = scmp.ne.s32.totalorder %s1014_s22, %s756_s12  ;;  %p1081_p2 = scmp.ne.s32.totalorder %s1075_s13, 0 }
  0x58   : > { %562 = vmatpush3.msra.mxu0 %v226_v1  ;;  %571 = vmatpush3.msra.mxu1 %v327_v4  ;;  %v323_v10 = vld [vmem:[#allocation9 + $0x58] sm:$0xff]  ;;  %v321_v12 = vld [vmem:[#allocation9 + $0x48] sm:$0xff]  ;;  %v320_v13 = vld [vmem:[#allocation9 + $0x40] sm:$0xff]  ;;  %s831_s18 = smov [#allocation10]  }
  0x59   : > { %563 = vmatprep.subr.mxu0 %v225_v3  ;;  %572 = vmatprep.subr.mxu1 %v326_v5  ;;  %v319_v14 = vld [vmem:[#allocation9 + $0x38] sm:$0xff]  ;;  %v318_v15 = vld [vmem:[#allocation9 + $0x30] sm:$0xff]  ;;  %v317_v16 = vld [vmem:[#allocation9 + $0x28] sm:$0xff]  ;;  %p758_p7 = pnand %p757_p5, %p1081_p2  ;;  %s760_s23 = sshll.u32 %s831_s18, 4  ;;  %s761_s23 = int_to_ptr.vmem [resolvable:$false] %s760_s23 }
  0x5a   : > { %564 = vmatpush3.msra.mxu0 %v225_v3  ;;  %573 = vmatpush3.msra.mxu1 %v326_v5  ;;  %v316_v17 = vld [vmem:[#allocation9 + $0x20] sm:$0xff]  ;;  %v315_v18 = vld [vmem:[#allocation9 + $0x18] sm:$0xff]  ;;  %v314_v19 = vld [vmem:[#allocation9 + $0x10] sm:$0xff]  ;;  %s762_s24 = scalar_lea.vmem %s761_s23, 512  ;;  %p763_p13 = scmp.lt.s32.totalorder %s1014_s22, %s761_s23 }
  0x5b   : > { %565 = vmatprep.subr.mxu0 %v224_v6  ;;  %574 = vmatprep.subr.mxu1 %v325_v7  ;;  %v313_v20 = vld [vmem:[#allocation9 + $0x8] sm:$0xff]  ;;  %v312_v21 = vld [vmem:[#allocation9] sm:$0xff]  ;;  %p759_p12 = pneg %p758_p7  ;;  %p764_p0 = scmp.lt.s32.totalorder %s762_s24, %s756_s12 }
  0x5c   : > { %566 = vmatpush3.msra.mxu0 %v224_v6  ;;  %575 = vmatpush3.msra.mxu1 %v325_v7 }
  0x5d   : > { %568 = vmatmul.mubr.msk.f32.vlgmr.msra.gmra.mxu0 %vm228_vm0, %v223_v8  ;;  %576 = vmatprep.subr.mxu1 %v324_v9  ;;  %p765_p10 = por %p764_p0, %p763_p13 }
  0x5e   : > { %577 = vmatpush3.msra.mxu1 %v324_v9 }
  0x5f   : > { %578 = vmatprep.subr.mxu1 %v323_v10  ;;  %p766_p3 = pnand %p765_p10, %p759_p12 }
  0x60   : > { %579 = vmatpush3.msra.mxu1 %v323_v10 }
  0x61   : > { %580 = vmatprep.subr.mxu1 %v322_v11 }
  0x62   : > { %581 = vmatpush3.msra.mxu1 %v322_v11 }
  0x63   : > { %582 = vmatprep.subr.mxu1 %v321_v12 }
  0x64   : > { %583 = vmatpush3.msra.mxu1 %v321_v12 }
  0x65   : > { %584 = vmatprep.subr.mxu1 %v320_v13 }
  0x66   : > { %585 = vmatpush3.msra.mxu1 %v320_v13 }
  0x67   : > { %586 = vmatprep.subr.mxu1 %v319_v14 }
  0x68   : > { %587 = vmatpush3.msra.mxu1 %v319_v14 }
  0x69   : > { %588 = vmatprep.subr.mxu1 %v318_v15 }
  0x6a   : > { %589 = vmatpush3.msra.mxu1 %v318_v15 }
  0x6b   : > { %590 = vmatprep.subr.mxu1 %v317_v16 }
  0x6c   : > { %591 = vmatpush3.msra.mxu1 %v317_v16 }
  0x6d   : > { %592 = vmatprep.subr.mxu1 %v316_v17 }
  0x6e   : > { %593 = vmatpush3.msra.mxu1 %v316_v17 }
  0x6f   : > { %594 = vmatprep.subr.mxu1 %v315_v18 }
  0x70   : > { %595 = vmatpush3.msra.mxu1 %v315_v18 }
  0x71   : > { %596 = vmatprep.subr.mxu1 %v314_v19 }
  0x72   : > { %597 = vmatpush3.msra.mxu1 %v314_v19 }
  0x73   : > { %598 = vmatprep.subr.mxu1 %v313_v20 }
  0x74   : > { %599 = vmatpush3.msra.mxu1 %v313_v20 }
  0x75   : > { %600 = vmatprep.subr.mxu1 %v312_v21 }
  0x76   : > { %601 = vmatpush3.msra.mxu1 %v312_v21 }
 0x11d   : > { %v569_v22 = vpop.f32.mrf.mxu0 }
 0x11e   : > { %v311_v25 = vmax.f32 %v569_v22, 0.0 }
 0x11f   : > { %v301_v23 = vpop.f32.mrf.mxu0 }
 0x120   : > { %v310_v24 = vmax.f32 %v301_v23, 0.0 }
 0x122   : > { %602 = vmatprep.mubr.f32.mxu1 %v310_v24 }
 0x123   : > { %603 = vmatmul.mubr.f32.vlgmr.msra.gmra.mxu1 %v311_v25 }
 0x1e3   : > { %v604_v26 = vpop.f32.mrf.mxu1 }
 0x1e4   : > { %v404_v27 = vmax.f32 %v604_v26, 0.0 }
 0x1e5   : > { %v394_v28 = vpop.f32.mrf.mxu1 }
 0x1e6   : > { %406 = vst [vmem:[%s219_s20 + $0x8] sm:$0xff] %v404_v27  ;;  %v403_v29 = vmax.f32 %v394_v28, 0.0 }
 0x1e8   : > { %405 = vst [vmem:[%s219_s20] sm:$0xff] %v403_v29 }
 0x1e9   : > { %769 = shalt.err (!%p766_p3)
}
 0x1ea   : > { %s770_s19 = scalar_lea.hbm %s1019_s5, 256  ;;  %s774_s28 = scalar_lea.hbm %s1066_s4, 512 }
 0x1eb   : > { %p771_p11 = scmp.ne.s32.totalorder %s1019_s5, %s770_s19  ;;  %p775_p4 = scmp.lt.s32.totalorder %s1019_s5, %s1066_s4 }
 0x1ec   : > { %p776_p6 = scmp.lt.s32.totalorder %s774_s28, %s770_s19 }
 0x1ed   : > { %p772_p9 = pnand %p771_p11, %p1081_p2 }
 0x1ee   : > { %p777_p8 = por %p776_p6, %p775_p4 }
 0x1ef   : > { %p773_p1 = pneg %p772_p9 }
 0x1f1   : > { %p778_p5 = pnand %p777_p8, %p773_p1 }
 0x1f3   : > { %781 = shalt.err (!%p778_p5)
}
 0x1f4   : > { %s832_s6 = smov 128   ;;  %s833_s20 = smov 8  }
 0x1f5   : > { %615 = dma.vmem_to_hbm [thread:$0]  (%p1081_p2), %s1014_s22, 256, %s1019_s5, %s408_s7, %s832_s6, %s832_s6, %s833_s20  }
 0x1f6 PF: > { %s436_s29 = sand.u32 1, %s812_s15   ;;  %p1082_p7 = scmp.ne.s32.totalorder %s1072_s21, 0 }
 0x1f7   : > { %p1083_p12 = scmp.ge.s32.totalorder %s824_s17, 2  ;;  %s437_s30 = scalar_lea.sflag [#allocation6], %s436_s29 }
 0x1f9   : > { %p629_p13 = pnand %p1083_p12, %p1082_p7 }
 0x1fb   : > { %p630_p0 = pneg %p629_p13 }
 0x1fd   : > { %807 = dma.done.wait (%p630_p0), %s437_s30, 256  }
 0x1fe   : > { %809 = vsyncadd (%p630_p0), %s437_s30, 4294967040  ;;  %p19_p10 = scmp.ge.s32.totalorder %s937_s10, 4   ;;  %s1084_s15 = smov %s816_s0 }
 0x1ff   : > { %s1085_s0 = smov %s820_s16  ;;  %s1086_s16 = smov %s953_s14 }
 0x200   : > { %s1087_s17 = smov %s937_s10  ;;  %21 = sbr.rel (!%p19_p10) target bundleno = 6 (0x6), region = 85 }
 0x205   :  { %442 = vsyncpa [#allocation5], 1 }
 0x206   :  { %444 = vsyncpa [#allocation5 + $0x1], 1 }
 0x207   :  { %445 = vsyncpa [#allocation8], 1 }
 0x208   :  { %446 = vsyncpa [#allocation6], 1 }
 0x209   :  { %448 = vsyncpa [#allocation6 + $0x1], 1 }

</bundles_post_ra>
